<compile_context>
chip_gen: v7x
topology: tpu7x:2x2x1
jax: 0.10.0
libtpu: 0.0.40
codegen_flags: <defaults>
</compile_context>

<pallas_src>
import math

import jax
import jax.numpy as jnp
from jax import lax
from jax.experimental import pallas as pl
from jax.experimental.pallas import tpu as pltpu

V_TH = 1.0
DECAY = 0.25
TEMP = 3.0          # surrogate-gradient temperature (backward only)
GRAD_SCALE = 0.1    # backward only

_LANE = 128
_SUBLANE = 8


def _lif_kernel(x_ref, out_ref):
    # x_ref / out_ref block: (step, rt, 128).  The full time recurrence for
    # this row tile runs inside the body; mem is carried as a loop value.
    steps = x_ref.shape[0]
    thresh = 0.5 * V_TH  # mem / v_th > 0.5  <=>  mem > 0.5 * v_th (v_th > 0)

    def body(t, mem):
        m = mem * DECAY + x_ref[t]
        spk = m > thresh
        out_ref[t] = spk.astype(out_ref.dtype)
        return jnp.where(spk, 0.0, m)       # == mem * (1 - spike)

    lax.fori_loop(0, steps, body,
                  jnp.zeros(x_ref.shape[1:], jnp.float32),
                  unroll=True)


def _round_up(x, m):
    return -(-x // m) * m


def _choose_row_tile(r, step):
    """Rows-per-block: ~2 MiB fp32 blocks, multiple of 8, >=2 blocks if possible."""
    target_block_bytes = 2 << 20
    rt = max(_SUBLANE,
             (target_block_bytes // (step * _LANE * 4)) // _SUBLANE * _SUBLANE)
    if r >= 2 * _SUBLANE:
        # keep >=2 blocks on the parallel axis (v7x has 2 TensorCores per chip)
        half = _round_up(_round_up(r, _SUBLANE) // 2, _SUBLANE)
        rt = min(rt, half)
    return min(rt, _round_up(r, _SUBLANE))


def lif_act(x, step):
    """x: [step, B, C, H, W] float32 -> same-shape float32 spikes (0.0 / 1.0)."""
    assert x.shape[0] == step
    orig_shape = x.shape
    n = math.prod(orig_shape[1:])

    r = pl.cdiv(n, _LANE)                 # rows of 128 lanes per time step
    rt = _choose_row_tile(r, step)
    r_pad = _round_up(r, rt)
    n_pad = r_pad * _LANE

    x2 = x.reshape(step, n).astype(jnp.float32)
    if n_pad != n:
        x2 = jnp.pad(x2, ((0, 0), (0, n_pad - n)))   # zero pad -> zero spikes
    x3 = x2.reshape(step, r_pad, _LANE)

    num_blocks = r_pad // rt

    out = pl.pallas_call(
        _lif_kernel,
        out_shape=jax.ShapeDtypeStruct((step, r_pad, _LANE), jnp.float32),
        grid_spec=pltpu.PrefetchScalarGridSpec(
            num_scalar_prefetch=0,
            grid=(num_blocks,),
            in_specs=[pl.BlockSpec((step, rt, _LANE), lambda i: (0, i, 0))],
            out_specs=pl.BlockSpec((step, rt, _LANE), lambda i: (0, i, 0)),
        ),
        compiler_params=pltpu.CompilerParams(
            dimension_semantics=("parallel",)),
        cost_estimate=pl.CostEstimate(
            flops=4 * step * n_pad,           # mul + add + cmp + select / elem
            transcendentals=0,
            bytes_accessed=2 * step * n_pad * 4),
    )(x3)

    return out.reshape(step, n_pad)[:, :n].reshape(orig_shape)


def lif_act_reference(x, step):
    """Pure-JAX reference matching the PyTorch forward."""
    u = jnp.zeros_like(x[0])
    outs = []
    for t in range(step):
        mem = u * DECAY + x[t]
        spike = (mem / V_TH > 0.5).astype(jnp.float32)
        u = mem * (1.0 - spike)
        outs.append(spike)
    return jnp.stack(outs)


if __name__ == "__main__":
    step, B, C, H, W = 4, 2, 4, 16, 16

    # BatchNorm2d(channel) parameters from __init__; the forward path never
    # applies them (mem_bn = mem), so they do not affect the output.
    bn_weight = jnp.ones((C,), jnp.float32)
    bn_bias = jnp.zeros((C,), jnp.float32)
    bn_running_mean = jnp.zeros((C,), jnp.float32)
    bn_running_var = jnp.ones((C,), jnp.float32)

    key = jax.random.PRNGKey(0)
    x = jax.random.normal(key, (step, B, C, H, W), dtype=jnp.float32)

    out = jax.block_until_ready(lif_act(x, step))
    ref = lif_act_reference(x, step)

    assert out.shape == x.shape
    assert jnp.array_equal(out, ref), "Pallas output mismatch vs reference"

    print("KERNEL_OK")
</pallas_src>

<mosaic_0001>
module attributes {stable_mosaic.version = 11 : i64} {
  func.func @_lif_kernel(%arg0: i32, %arg1: memref<4x8x128xf32, #tpu.memory_space<vmem>>, %arg2: memref<4x8x128xf32, #tpu.memory_space<vmem>>) attributes {dimension_semantics = [#tpu.dimension_semantics<parallel>], iteration_bounds = array<i64: 2>, scalar_prefetch = 0 : i64, scratch_operands = 0 : i64, tpu.core_type = #tpu.core_type<tc>, window_params = [{transform_indices = @transform_0, window_bounds = array<i64: 4, 8, 128>}, {transform_indices = @transform_1, window_bounds = array<i64: 4, 8, 128>}]} {
    %cst = arith.constant 0.000000e+00 : f32
    %0 = vector.broadcast %cst : f32 to vector<8x128xf32>
    %c0_i32 = arith.constant 0 : i32
    %cst_0 = arith.constant 2.500000e-01 : f32
    %1 = vector.broadcast %cst_0 : f32 to vector<8x128xf32>
    %2 = arith.mulf %0, %1 : vector<8x128xf32>
    %3 = arith.index_cast %c0_i32 : i32 to index
    %c0 = arith.constant 0 : index
    %c0_1 = arith.constant 0 : index
    %4 = vector.load %arg1[%3, %c0, %c0_1] : memref<4x8x128xf32, #tpu.memory_space<vmem>>, vector<1x8x128xf32>
    %5 = vector.shape_cast %4 : vector<1x8x128xf32> to vector<8x128xf32>
    %6 = arith.addf %2, %5 : vector<8x128xf32>
    %cst_2 = arith.constant 5.000000e-01 : f32
    %7 = vector.broadcast %cst_2 : f32 to vector<8x128xf32>
    %8 = arith.cmpf ogt, %6, %7 : vector<8x128xf32>
    %9 = arith.extui %8 : vector<8x128xi1> to vector<8x128xi32>
    %10 = arith.sitofp %9 : vector<8x128xi32> to vector<8x128xf32>
    %11 = arith.index_cast %c0_i32 : i32 to index
    %c0_3 = arith.constant 0 : index
    %c0_4 = arith.constant 0 : index
    %12 = vector.load %arg2[%11, %c0_3, %c0_4] : memref<4x8x128xf32, #tpu.memory_space<vmem>>, vector<1x8x128xf32>
    %13 = vector.shape_cast %12 : vector<1x8x128xf32> to vector<8x128xf32>
    %14 = vector.shape_cast %10 : vector<8x128xf32> to vector<1x8x128xf32>
    tpu.vector_store %arg2[%11, %c0_3, %c0_4], %14 {strides = array<i32>} : memref<4x8x128xf32, #tpu.memory_space<vmem>>, vector<1x8x128xf32>,
    %cst_5 = arith.constant 0.000000e+00 : f32
    %15 = vector.broadcast %cst_5 : f32 to vector<8x128xf32>
    %16 = arith.select %8, %15, %6 : vector<8x128xi1>, vector<8x128xf32>
    %c1_i32 = arith.constant 1 : i32
    %cst_6 = arith.constant 2.500000e-01 : f32
    %17 = vector.broadcast %cst_6 : f32 to vector<8x128xf32>
    %18 = arith.mulf %16, %17 : vector<8x128xf32>
    %19 = arith.index_cast %c1_i32 : i32 to index
    %c0_7 = arith.constant 0 : index
    %c0_8 = arith.constant 0 : index
    %20 = vector.load %arg1[%19, %c0_7, %c0_8] : memref<4x8x128xf32, #tpu.memory_space<vmem>>, vector<1x8x128xf32>
    %21 = vector.shape_cast %20 : vector<1x8x128xf32> to vector<8x128xf32>
    %22 = arith.addf %18, %21 : vector<8x128xf32>
    %cst_9 = arith.constant 5.000000e-01 : f32
    %23 = vector.broadcast %cst_9 : f32 to vector<8x128xf32>
    %24 = arith.cmpf ogt, %22, %23 : vector<8x128xf32>
    %25 = arith.extui %24 : vector<8x128xi1> to vector<8x128xi32>
    %26 = arith.sitofp %25 : vector<8x128xi32> to vector<8x128xf32>
    %27 = arith.index_cast %c1_i32 : i32 to index
    %c0_10 = arith.constant 0 : index
    %c0_11 = arith.constant 0 : index
    %28 = vector.load %arg2[%27, %c0_10, %c0_11] : memref<4x8x128xf32, #tpu.memory_space<vmem>>, vector<1x8x128xf32>
    %29 = vector.shape_cast %28 : vector<1x8x128xf32> to vector<8x128xf32>
    %30 = vector.shape_cast %26 : vector<8x128xf32> to vector<1x8x128xf32>
    tpu.vector_store %arg2[%27, %c0_10, %c0_11], %30 {strides = array<i32>} : memref<4x8x128xf32, #tpu.memory_space<vmem>>, vector<1x8x128xf32>,
    %cst_12 = arith.constant 0.000000e+00 : f32
    %31 = vector.broadcast %cst_12 : f32 to vector<8x128xf32>
    %32 = arith.select %24, %31, %22 : vector<8x128xi1>, vector<8x128xf32>
    %c2_i32 = arith.constant 2 : i32
    %cst_13 = arith.constant 2.500000e-01 : f32
    %33 = vector.broadcast %cst_13 : f32 to vector<8x128xf32>
    %34 = arith.mulf %32, %33 : vector<8x128xf32>
    %35 = arith.index_cast %c2_i32 : i32 to index
    %c0_14 = arith.constant 0 : index
    %c0_15 = arith.constant 0 : index
    %36 = vector.load %arg1[%35, %c0_14, %c0_15] : memref<4x8x128xf32, #tpu.memory_space<vmem>>, vector<1x8x128xf32>
    %37 = vector.shape_cast %36 : vector<1x8x128xf32> to vector<8x128xf32>
    %38 = arith.addf %34, %37 : vector<8x128xf32>
    %cst_16 = arith.constant 5.000000e-01 : f32
    %39 = vector.broadcast %cst_16 : f32 to vector<8x128xf32>
    %40 = arith.cmpf ogt, %38, %39 : vector<8x128xf32>
    %41 = arith.extui %40 : vector<8x128xi1> to vector<8x128xi32>
    %42 = arith.sitofp %41 : vector<8x128xi32> to vector<8x128xf32>
    %43 = arith.index_cast %c2_i32 : i32 to index
    %c0_17 = arith.constant 0 : index
    %c0_18 = arith.constant 0 : index
    %44 = vector.load %arg2[%43, %c0_17, %c0_18] : memref<4x8x128xf32, #tpu.memory_space<vmem>>, vector<1x8x128xf32>
    %45 = vector.shape_cast %44 : vector<1x8x128xf32> to vector<8x128xf32>
    %46 = vector.shape_cast %42 : vector<8x128xf32> to vector<1x8x128xf32>
    tpu.vector_store %arg2[%43, %c0_17, %c0_18], %46 {strides = array<i32>} : memref<4x8x128xf32, #tpu.memory_space<vmem>>, vector<1x8x128xf32>,
    %cst_19 = arith.constant 0.000000e+00 : f32
    %47 = vector.broadcast %cst_19 : f32 to vector<8x128xf32>
    %48 = arith.select %40, %47, %38 : vector<8x128xi1>, vector<8x128xf32>
    %c3_i32 = arith.constant 3 : i32
    %cst_20 = arith.constant 2.500000e-01 : f32
    %49 = vector.broadcast %cst_20 : f32 to vector<8x128xf32>
    %50 = arith.mulf %48, %49 : vector<8x128xf32>
    %51 = arith.index_cast %c3_i32 : i32 to index
    %c0_21 = arith.constant 0 : index
    %c0_22 = arith.constant 0 : index
    %52 = vector.load %arg1[%51, %c0_21, %c0_22] : memref<4x8x128xf32, #tpu.memory_space<vmem>>, vector<1x8x128xf32>
    %53 = vector.shape_cast %52 : vector<1x8x128xf32> to vector<8x128xf32>
    %54 = arith.addf %50, %53 : vector<8x128xf32>
    %cst_23 = arith.constant 5.000000e-01 : f32
    %55 = vector.broadcast %cst_23 : f32 to vector<8x128xf32>
    %56 = arith.cmpf ogt, %54, %55 : vector<8x128xf32>
    %57 = arith.extui %56 : vector<8x128xi1> to vector<8x128xi32>
    %58 = arith.sitofp %57 : vector<8x128xi32> to vector<8x128xf32>
    %59 = arith.index_cast %c3_i32 : i32 to index
    %c0_24 = arith.constant 0 : index
    %c0_25 = arith.constant 0 : index
    %60 = vector.load %arg2[%59, %c0_24, %c0_25] : memref<4x8x128xf32, #tpu.memory_space<vmem>>, vector<1x8x128xf32>
    %61 = vector.shape_cast %60 : vector<1x8x128xf32> to vector<8x128xf32>
    %62 = vector.shape_cast %58 : vector<8x128xf32> to vector<1x8x128xf32>
    tpu.vector_store %arg2[%59, %c0_24, %c0_25], %62 {strides = array<i32>} : memref<4x8x128xf32, #tpu.memory_space<vmem>>, vector<1x8x128xf32>,
    %cst_26 = arith.constant 0.000000e+00 : f32
    %63 = vector.broadcast %cst_26 : f32 to vector<8x128xf32>
    %64 = arith.select %56, %63, %54 : vector<8x128xi1>, vector<8x128xf32>
    %c4_i32 = arith.constant 4 : i32
    return
  }
  func.func @transform_0(%arg0: i32) -> (i32, i32, i32) {
    %c0_i32 = arith.constant 0 : i32
    %c0_i32_0 = arith.constant 0 : i32
    %c0_i32_1 = arith.constant 0 : i32
    return %c0_i32, %arg0, %c0_i32_0 : i32, i32, i32
  }
  func.func @transform_1(%arg0: i32) -> (i32, i32, i32) {
    %c0_i32 = arith.constant 0 : i32
    %c0_i32_0 = arith.constant 0 : i32
    %c0_i32_1 = arith.constant 0 : i32
    return %c0_i32, %arg0, %c0_i32_0 : i32, i32, i32
  }
}

</mosaic_0001>

<bundles_post_ra>
// kernel: tpu_custom_call.1
= control target key start
LH: loop header
LB: loop body
LE: loop exit
PB: predicated region body
PF: predicated region fallthrough
CT: control target
= control target key end

     0   :  { %6 = vsyncpa [#allocation3], 0  ;;  %s612_s0 = inlined_call_operand.hbm [shape: f32[4,16,128], index: 0, kind: input, shape index: {}]   ;;  %s613_s1 = inlined_call_operand.hbm [shape: f32[4,16,128], index: 1, kind: output, shape index: {}]  }
   0x1   :  { %8 = vsyncpa [#allocation3 + $0x1], 0 }
   0x2   :  { %9 = vsyncpa [#allocation4], 0 }
   0x3   :  { %11 = vsyncpa [#allocation4 + $0x1], 0  ;;  %s448_s6 = smov 0   ;;  %s450_s7 = smov 0  }
   0x4   :  { %s452_s8 = smov 0   ;;  %s454_s9 = smov 0  }
   0x5 LB: > { %s469_s10 = sadd.s32 4294967295, %s427_s9   ;;  %s256_s11 = sadd.s32 4294967294, %s427_s9   ;;  %s427_s9 = sphi %s454_s9, %s627_s9   ;;  %s423_s8 = sphi %s452_s8, %s626_s8   ;;  %s419_s7 = sphi %s450_s7, %s625_s7   ;;  %s415_s6 = sphi %s448_s6, %s624_s6  }
   0x6   : > { %s473_s12 = sadd.s32 1, %s427_s9   ;;  %s24_s13 = sadd.s32 1, %s423_s8 }
   0x7   : > { %s21_s14 = ssub.s32 %s427_s9, %s473_s12  ;;  %p31_p0 = scmp.ne.s32.totalorder %s423_s8, %s419_s7 }
   0x8   : > { %p22_p1 = scmp.eq.s32.totalorder %s21_s14, 0  ;;  %p32_p2 = scmp.eq.s32.totalorder %s427_s9, 0 }
   0x9   : > { %p37_p3 = scmp.ne.s32.totalorder %s419_s7, %s415_s6  ;;  %p38_p4 = scmp.eq.s32.totalorder %s469_s10, 0 }
   0xa   : > { %s485_s15 = scalar_select %p22_p1, %s423_s8, %s24_s13  }
   0xb   : > { %p487_p5 = por %p32_p2, %p31_p0  ;;  %p491_p6 = por %p38_p4, %p37_p3 }
   0xc   : > { %p61_p7 = scmp.eq.s32.totalorder %s469_s10, 1  ;;  %p67_p8 = scmp.eq.s32.totalorder %s256_s11, 1 }
   0xd   : > { %p290_p10 = scmp.lt.s32.totalorder %s427_s9, 2  ;;  %s87_s20 = sand.u32 1, %s423_s8  }
   0xe   : > { %p498_p11 = por %p61_p7, %p31_p0  ;;  %p502_p12 = por %p67_p8, %p37_p3 }
   0xf   : > { %s260_s21 = sshll.u32 %s427_s9, 7  ;;  %s259_s22 = sshll.u32 %s87_s20, 5 }
  0x10   : > { %s617_s18 = scalar_select %p498_p11, 1, 0 }
  0x11   : > { %s618_s19 = scalar_select %p502_p12, 1, 0 }
  0x12   : > { %s511_s25 = scalar_lea.hbm %s612_s0, %s260_s21  ;;  %s91_s26 = scalar_lea.vmem [#allocation2], %s259_s22 }
  0x13   : > { %s97_s27 = sshll.u32 %s91_s26, 4  ;;  %p515_p13 = pnand %p290_p10, %p487_p5  ;;  %s519_s27 = int_to_ptr.vmem [resolvable:$true] %s97_s27 }
  0x14   : > { %s522_s29 = scalar_lea.sflag [#allocation3], %s87_s20  ;;  %s331_s30 = scalar_lea.hbm %s511_s25, 512 }
  0x15   : > { %p332_p1 = scmp.ne.s32.totalorder %s511_s25, %s331_s30  ;;  %p333_p2 = pneg %p515_p13 }
  0x16   : > { %s336_s4 = scalar_lea.hbm %s612_s0, 1024  ;;  %p337_p5 = scmp.lt.u32.totalorder %s511_s25, %s612_s0 }
  0x17   : > { %p334_p3 = pnand %p333_p2, %p332_p1  ;;  %p338_p7 = scmp.lt.u32.totalorder %s336_s4, %s331_s30 }
  0x18   : > { %p340_p10 = scmp.lt.u32.totalorder %s331_s30, %s511_s25 }
  0x19   : > { %p335_p4 = pneg %p334_p3  ;;  %p339_p8 = por %p338_p7, %p337_p5 }
  0x1b   : > { %p341_p9 = por %p340_p10, %p339_p8 }
  0x1d   : > { %p342_p0 = pnand %p341_p9, %p335_p4 }
  0x1f   : > { %345 = shalt.err (!%p342_p0)
}
  0x20   : > { %s346_s13 = scalar_lea.vmem %s519_s27, 512  ;;  %s429_s14 = smov [#allocation2]  }
  0x21   : > { %p347_p1 = scmp.ne.s32.totalorder %s519_s27, %s346_s13  ;;  %s351_s16 = sshll.u32 %s429_s14, 4  ;;  %s352_s16 = int_to_ptr.vmem [resolvable:$false] %s351_s16 }
  0x22   : > { %s353_s20 = scalar_lea.vmem %s352_s16, 1024  ;;  %p354_p11 = scmp.lt.s32.totalorder %s519_s27, %s352_s16 }
  0x23   : > { %p349_p3 = pnand %p347_p1, %p333_p2  ;;  %p355_p5 = scmp.lt.s32.totalorder %s353_s20, %s346_s13 }
  0x25   : > { %p350_p12 = pneg %p349_p3  ;;  %p356_p7 = por %p355_p5, %p354_p11 }
  0x27   : > { %p357_p8 = pnand %p356_p7, %p350_p12 }
  0x29   : > { %360 = shalt.err (!%p357_p8)
}
  0x2a   : > { %s430_s21 = smov 256   ;;  %s431_s22 = smov 128  }
  0x2b   : > { %s432_s23 = smov 8   ;;  %p105_p9 = scmp.lt.s32.totalorder %s427_s9, 3 }
  0x2c   : > { %285 = dma.hbm_to_vmem [thread:$0]  (!%p515_p13), %s511_s25, 512, %s519_s27, %s522_s29, %s430_s21, %s431_s22, %s432_s23  }
  0x2d   : > { %p620_p0 = scmp.ge.s32.totalorder %s427_s9, 1 }
  0x2f   : > { %p106_p2 = pnand %p620_p0, %p105_p9 }
  0x30   : > { %s554_s24 = sand.u32 (!%p106_p2), 1, %s419_s7  }
  0x31   : > { %109 = sbr.rel (%p106_p2) target bundleno = 94 (0x5e), region = 24  ;;  %s262_s26 = sshll.u32 (!%p106_p2), %s554_s24, 5 }
  0x32   : > { %s112_s30 = scalar_lea.sflag (!%p106_p2), [#allocation3], %s554_s24  ;;  %s115_s2 = scalar_lea.vmem (!%p106_p2), [#allocation2], %s262_s26 }
  0x38   : > { %406 = dma.done.wait (%p491_p6), %s112_s30, 512  }
  0x39   : > { %408 = vsyncadd (%p491_p6), %s112_s30, 4294966784  ;;  %v134_v0 = vld [vmem:[%s115_s2] sm:$0xff]  ;;  %v433_v1 = vmov 0.0   ;;  %v265_v4 = vld [vmem:[%s115_s2 + $0x8] sm:$0xff]  ;;  %s133_s25 = scalar_lea.vmem [#allocation5], %s262_s26  ;;  %s275_s27 = sshll.u32 %s469_s10, 7 }
  0x3a   : > { %vm136_vm0 = vcmp.gt.f32.partialorder %v134_v0, 0.5  ;;  %v268_v9 = vld [vmem:[%s115_s2 + $0x10] sm:$0xff]  ;;  %s183_s17 = sshll.u32 %s133_s25, 4  ;;  %v271_v14 = vld [vmem:[%s115_s2 + $0x18] sm:$0xff]  ;;  %s568_s3 = scalar_lea.hbm %s613_s1, %s275_s27  ;;  %s563_s17 = int_to_ptr.vmem [resolvable:$true] %s183_s17 }
  0x3b   : > { %v264_v2 = vsel %vm136_vm0, 1.0, %v433_v1  ;;  %v140_v3 = vsel %vm136_vm0, 0.0, %v134_v0  ;;  %s171_s4 = scalar_lea.sflag [#allocation4], %s554_s24  ;;  %s361_s5 = scalar_lea.vmem %s563_s17, 512 }
  0x3c   : > { %139 = vst [vmem:[%s133_s25] sm:$0xff] %v264_v2  ;;  %v141_v5 = vmul.f32 0.25, %v140_v3  ;;  %p362_p6 = scmp.ne.s32.totalorder %s563_s17, %s361_s5  ;;  %p621_p11 = scmp.ne.s32.totalorder %s617_s18, 0 }
  0x3d   : > { %s434_s10 = smov [#allocation5]  }
  0x3e   : > { %v144_v6 = vadd.f32 %v265_v4, %v141_v5  ;;  %p363_p12 = pnand %p362_p6, %p621_p11  ;;  %s365_s11 = sshll.u32 %s434_s10, 4  ;;  %s366_s11 = int_to_ptr.vmem [resolvable:$false] %s365_s11 }
  0x3f   : > { %s367_s13 = scalar_lea.vmem %s366_s11, 1024  ;;  %p368_p4 = scmp.lt.s32.totalorder %s563_s17, %s366_s11 }
  0x40   : > { %vm145_vm1 = vcmp.gt.f32.partialorder %v144_v6, 0.5  ;;  %p364_p13 = pneg %p363_p12  ;;  %p369_p10 = scmp.lt.s32.totalorder %s367_s13, %s361_s5 }
  0x41   : > { %v266_v7 = vsel %vm145_vm1, 1.0, %v433_v1  ;;  %v150_v8 = vsel %vm145_vm1, 0.0, %v144_v6 }
  0x42   : > { %267 = vst [vmem:[%s133_s25 + $0x8] sm:$0xff] %v266_v7  ;;  %v151_v10 = vmul.f32 0.25, %v150_v8  ;;  %p370_p1 = por %p369_p10, %p368_p4 }
  0x44   : > { %v154_v11 = vadd.f32 %v268_v9, %v151_v10  ;;  %p371_p3 = pnand %p370_p1, %p364_p13 }
  0x46   : > { %vm155_vm2 = vcmp.gt.f32.partialorder %v154_v11, 0.5 }
  0x47   : > { %v269_v12 = vsel %vm155_vm2, 1.0, %v433_v1  ;;  %v160_v13 = vsel %vm155_vm2, 0.0, %v154_v11 }
  0x48   : > { %270 = vst [vmem:[%s133_s25 + $0x10] sm:$0xff] %v269_v12  ;;  %v161_v15 = vmul.f32 0.25, %v160_v13 }
  0x4a   : > { %v164_v16 = vadd.f32 %v271_v14, %v161_v15 }
  0x4c   : > { %vm165_vm3 = vcmp.gt.f32.partialorder %v164_v16, 0.5 }
  0x4d   : > { %v272_v17 = vsel %vm165_vm3, 1.0, %v433_v1 }
  0x4e   : > { %273 = vst [vmem:[%s133_s25 + $0x18] sm:$0xff] %v272_v17 }
  0x4f   : > { %374 = shalt.err (!%p371_p3)
}
  0x50   : > { %s375_s14 = scalar_lea.hbm %s568_s3, 512  ;;  %s379_s21 = scalar_lea.hbm %s613_s1, 1024 }
  0x51   : > { %p376_p5 = scmp.ne.s32.totalorder %s568_s3, %s375_s14  ;;  %p380_p9 = scmp.lt.u32.totalorder %s568_s3, %s613_s1 }
  0x52   : > { %p381_p0 = scmp.lt.u32.totalorder %s379_s21, %s375_s14  ;;  %p383_p6 = scmp.lt.u32.totalorder %s375_s14, %s568_s3 }
  0x53   : > { %p377_p7 = pnand %p376_p5, %p621_p11 }
  0x54   : > { %p382_p2 = por %p381_p0, %p380_p9 }
  0x55   : > { %p378_p8 = pneg %p377_p7 }
  0x56   : > { %p384_p12 = por %p383_p6, %p382_p2 }
  0x58   : > { %p385_p13 = pnand %p384_p12, %p378_p8 }
  0x5a   : > { %388 = shalt.err (!%p385_p13)
}
  0x5b   : > { %s435_s26 = smov 128   ;;  %s436_s30 = smov 256  }
  0x5c   : > { %s437_s2 = smov 8  }
  0x5d   : > { %280 = dma.vmem_to_hbm [thread:$0]  (%p621_p11), %s563_s17, 512, %s568_s3, %s171_s4, %s435_s26, %s436_s30, %s437_s2  }
  0x5e PF: > { %s198_s25 = sand.u32 1, %s415_s6   ;;  %p622_p4 = scmp.ne.s32.totalorder %s618_s19, 0 }
  0x5f   : > { %p623_p10 = scmp.ge.s32.totalorder %s427_s9, 2  ;;  %s199_s27 = scalar_lea.sflag [#allocation4], %s198_s25 }
  0x61   : > { %p287_p1 = pnand %p623_p10, %p622_p4 }
  0x63   : > { %410 = dma.done.wait (!%p287_p1), %s199_s27, 512  }
  0x64   : > { %412 = vsyncadd (!%p287_p1), %s199_s27, 4294966784  ;;  %p14_p3 = scmp.ge.s32.totalorder %s473_s12, 4   ;;  %s624_s6 = smov %s419_s7 }
  0x65   : > { %s625_s7 = smov %s423_s8  ;;  %s626_s8 = smov %s485_s15 }
  0x66   : > { %s627_s9 = smov %s473_s12  ;;  %16 = sbr.rel (!%p14_p3) target bundleno = 5 (0x5), region = 75 }
  0x6d   :  { %204 = vsyncpa [#allocation3], 1 }
  0x6e   :  { %206 = vsyncpa [#allocation3 + $0x1], 1 }
  0x6f   :  { %207 = vsyncpa [#allocation4], 1 }
  0x70   :  { %209 = vsyncpa [#allocation4 + $0x1], 1 }

</bundles_post_ra>
